<compile_context>
chip_gen: v6e
topology: v6e:2x2x1
jax: 0.10.0
libtpu: 0.0.40
codegen_flags: <defaults>
</compile_context>

<pallas_src>
import math

import jax
import jax.numpy as jnp
from jax.experimental import pallas as pl
from jax.experimental.pallas import tpu as pltpu

_LANE = 128          # TPU lane width — output feature dims padded to this
_MAX_TB = 1024       # max batch rows per grid step (amortizes ~0.35us/step)


def _round_up(n, m):
    return ((n + m - 1) // m) * m


def _autoencoder_kernel(x_ref,
                        w1_ref, b1_ref,   # encoder Linear(num_inputs, 20)
                        w2_ref, b2_ref,   # encoder Linear(20, code_dim)   [cols padded]
                        w3_ref, b3_ref,   # decoder Linear(code_dim, 20)   [rows padded]
                        w4_ref, b4_ref,   # decoder Linear(20, num_inputs) [cols padded]
                        code_ref, out_ref):
    x = x_ref[...]

    # Encoder: Linear -> ReLU -> Linear
    h1 = jnp.dot(x, w1_ref[...], preferred_element_type=jnp.float32) + b1_ref[...]
    h1 = jnp.maximum(h1, 0.0)
    code = jnp.dot(h1, w2_ref[...], preferred_element_type=jnp.float32) + b2_ref[...]

    # Decoder: Linear -> ReLU -> Linear -> Sigmoid
    # (padded code columns are exactly zero and the matching w3 rows are zero,
    #  so the padded math equals the unpadded math on the valid columns)
    h2 = jnp.dot(code, w3_ref[...], preferred_element_type=jnp.float32) + b3_ref[...]
    h2 = jnp.maximum(h2, 0.0)
    logits = jnp.dot(h2, w4_ref[...], preferred_element_type=jnp.float32) + b4_ref[...]
    recon = jax.nn.sigmoid(logits)   # exp on EUP, numerically safe

    code_ref[...] = code.astype(code_ref.dtype)
    out_ref[...] = recon.astype(out_ref.dtype)


def autoencoder_20_forward(x, params):
    """Fused autoencoder forward pass. Returns (code, reconstruction)."""
    B, num_inputs = x.shape
    hidden = params["w1"].shape[1]          # 20
    code_dim = params["w2"].shape[1]

    # Lane-dense output widths.
    cd_p = _round_up(code_dim, _LANE)
    ni_p = _round_up(num_inputs, _LANE)

    def pad_cols(a, to):
        return a if a.shape[1] == to else jnp.pad(a, ((0, 0), (0, to - a.shape[1])))

    def pad_rows(a, to):
        return a if a.shape[0] == to else jnp.pad(a, ((0, to - a.shape[0]), (0, 0)))

    w1, b1 = params["w1"], params["b1"]
    w2 = pad_cols(params["w2"], cd_p)
    b2 = pad_cols(params["b2"], cd_p)
    w3 = pad_rows(params["w3"], cd_p)
    b3 = params["b3"]
    w4 = pad_cols(params["w4"], ni_p)
    b4 = pad_cols(params["b4"], ni_p)

    # Batch tiling: one block if the batch is small, otherwise _MAX_TB-row tiles
    # (multiple of 8, so the (8,128) sublane constraint is always satisfied).
    TB = B if B <= _MAX_TB else _MAX_TB
    grid = (pl.cdiv(B, TB),)

    # VMEM budget: double-buffered x + 2 outputs per step + resident weights.
    block_bytes = 4 * TB * (num_inputs + cd_p + ni_p)
    weight_bytes = 4 * (num_inputs * hidden + hidden
                        + hidden * cd_p + cd_p
                        + cd_p * hidden + hidden
                        + hidden * ni_p + ni_p)
    vmem_limit = int(min(max(4 * block_bytes + weight_bytes + (2 << 20), 4 << 20),
                         32 << 20))

    cost = pl.CostEstimate(
        flops=2 * B * (num_inputs * hidden + hidden * code_dim
                       + code_dim * hidden + hidden * num_inputs),
        transcendentals=B * num_inputs,                       # sigmoid exp
        bytes_accessed=4 * B * (2 * num_inputs + code_dim) + weight_bytes,
    )

    batch_map = lambda i: (i, 0)
    const_map = lambda i: (0, 0)

    code_p, recon_p = pl.pallas_call(
        _autoencoder_kernel,
        grid=grid,
        in_specs=[
            pl.BlockSpec((TB, num_inputs), batch_map),        # x
            pl.BlockSpec((num_inputs, hidden), const_map),    # w1
            pl.BlockSpec((1, hidden), const_map),             # b1
            pl.BlockSpec((hidden, cd_p), const_map),          # w2 (padded cols)
            pl.BlockSpec((1, cd_p), const_map),               # b2 (padded)
            pl.BlockSpec((cd_p, hidden), const_map),          # w3 (padded rows)
            pl.BlockSpec((1, hidden), const_map),             # b3
            pl.BlockSpec((hidden, ni_p), const_map),          # w4 (padded cols)
            pl.BlockSpec((1, ni_p), const_map),               # b4 (padded)
        ],
        out_specs=(
            pl.BlockSpec((TB, cd_p), batch_map),
            pl.BlockSpec((TB, ni_p), batch_map),
        ),
        out_shape=(
            jax.ShapeDtypeStruct((B, cd_p), jnp.float32),
            jax.ShapeDtypeStruct((B, ni_p), jnp.float32),
        ),
        compiler_params=pltpu.CompilerParams(
            dimension_semantics=("parallel",),
            vmem_limit_bytes=vmem_limit,
        ),
        cost_estimate=cost,
    )(x, w1, b1, w2, b2, w3, b3, w4, b4)

    # Strip the lane padding.
    return code_p[:, :code_dim], recon_p[:, :num_inputs]


def _xavier_uniform(key, fan_in, fan_out):
    # Matches nn.init.xavier_uniform_ bound; stored transposed as (in, out).
    bound = math.sqrt(6.0 / (fan_in + fan_out))
    return jax.random.uniform(key, (fan_in, fan_out), jnp.float32,
                              minval=-bound, maxval=bound)


def init_params(key, num_inputs, code_dim):
    k1, k2, k3, k4 = jax.random.split(key, 4)
    # init_weights: xavier_uniform_ on weights, bias filled with 0.01
    return {
        "w1": _xavier_uniform(k1, num_inputs, 20),
        "b1": jnp.full((1, 20), 0.01, jnp.float32),
        "w2": _xavier_uniform(k2, 20, code_dim),
        "b2": jnp.full((1, code_dim), 0.01, jnp.float32),
        "w3": _xavier_uniform(k3, code_dim, 20),
        "b3": jnp.full((1, 20), 0.01, jnp.float32),
        "w4": _xavier_uniform(k4, 20, num_inputs),
        "b4": jnp.full((1, num_inputs), 0.01, jnp.float32),
    }


def _reference_forward(x, p):
    """Pure-JAX reference of the same forward pass (for verification)."""
    h1 = jnp.maximum(x @ p["w1"] + p["b1"], 0.0)
    code = h1 @ p["w2"] + p["b2"]
    h2 = jnp.maximum(code @ p["w3"] + p["b3"], 0.0)
    recon = jax.nn.sigmoid(h2 @ p["w4"] + p["b4"])
    return code, recon


if __name__ == "__main__":
    key = jax.random.PRNGKey(0)
    k_x, k_p = jax.random.split(key)

    batch = 8
    num_inputs = 32
    code_dim = 8

    x = jax.random.normal(k_x, (batch, num_inputs), jnp.float32)
    params = init_params(k_p, num_inputs, code_dim)

    code, recon = autoencoder_20_forward(x, params)
    code = jax.block_until_ready(code)
    recon = jax.block_until_ready(recon)

    code_ref, recon_ref = _reference_forward(x, params)
    assert code.shape == (batch, code_dim)
    assert recon.shape == (batch, num_inputs)
    assert jnp.allclose(code, code_ref, atol=1e-5, rtol=1e-5)
    assert jnp.allclose(recon, recon_ref, atol=1e-5, rtol=1e-5)

    print("KERNEL_OK")
</pallas_src>

<mosaic_0001>
module attributes {stable_mosaic.version = 11 : i64} {
  func.func @_autoencoder_kernel(%arg0: i32, %arg1: memref<8x32xf32, #tpu.memory_space<vmem>>, %arg2: memref<32x20xf32, #tpu.memory_space<vmem>>, %arg3: memref<1x20xf32, #tpu.memory_space<vmem>>, %arg4: memref<20x128xf32, #tpu.memory_space<vmem>>, %arg5: memref<1x128xf32, #tpu.memory_space<vmem>>, %arg6: memref<128x20xf32, #tpu.memory_space<vmem>>, %arg7: memref<1x20xf32, #tpu.memory_space<vmem>>, %arg8: memref<20x128xf32, #tpu.memory_space<vmem>>, %arg9: memref<1x128xf32, #tpu.memory_space<vmem>>, %arg10: memref<8x128xf32, #tpu.memory_space<vmem>>, %arg11: memref<8x128xf32, #tpu.memory_space<vmem>>) attributes {dimension_semantics = [#tpu.dimension_semantics<parallel>], iteration_bounds = array<i64: 1>, scalar_prefetch = 0 : i64, scratch_operands = 0 : i64, tpu.core_type = #tpu.core_type<tc>, window_params = [{transform_indices = @transform_0, window_bounds = array<i64: 8, 32>}, {pipeline_mode = #tpu.pipeline_mode<synchronous>, transform_indices = @transform_1, window_bounds = array<i64: 32, 20>}, {pipeline_mode = #tpu.pipeline_mode<synchronous>, transform_indices = @transform_2, window_bounds = array<i64: 1, 20>}, {pipeline_mode = #tpu.pipeline_mode<synchronous>, transform_indices = @transform_3, window_bounds = array<i64: 20, 128>}, {pipeline_mode = #tpu.pipeline_mode<synchronous>, transform_indices = @transform_4, window_bounds = array<i64: 1, 128>}, {pipeline_mode = #tpu.pipeline_mode<synchronous>, transform_indices = @transform_5, window_bounds = array<i64: 128, 20>}, {pipeline_mode = #tpu.pipeline_mode<synchronous>, transform_indices = @transform_6, window_bounds = array<i64: 1, 20>}, {pipeline_mode = #tpu.pipeline_mode<synchronous>, transform_indices = @transform_7, window_bounds = array<i64: 20, 128>}, {pipeline_mode = #tpu.pipeline_mode<synchronous>, transform_indices = @transform_8, window_bounds = array<i64: 1, 128>}, {transform_indices = @transform_9, window_bounds = array<i64: 8, 128>}, {transform_indices = @transform_10, window_bounds = array<i64: 8, 128>}]} {
    %c0 = arith.constant 0 : index
    %c0_0 = arith.constant 0 : index
    %0 = vector.load %arg1[%c0, %c0_0] : memref<8x32xf32, #tpu.memory_space<vmem>>, vector<8x32xf32>
    %c0_1 = arith.constant 0 : index
    %c0_2 = arith.constant 0 : index
    %1 = vector.load %arg2[%c0_1, %c0_2] : memref<32x20xf32, #tpu.memory_space<vmem>>, vector<32x20xf32>
    %cst = arith.constant dense<0.000000e+00> : vector<8x20xf32>
    %2 = tpu.matmul %0, %1, %cst {dimension_numbers = #tpu.dot_dimension_numbers<[1], [0], [0], [1], [0, 0, 1, 1], [], []>} : vector<8x32xf32>, vector<32x20xf32>, vector<8x20xf32> -> vector<8x20xf32>
    %c0_3 = arith.constant 0 : index
    %c0_4 = arith.constant 0 : index
    %3 = vector.load %arg3[%c0_3, %c0_4] : memref<1x20xf32, #tpu.memory_space<vmem>>, vector<1x20xf32>
    %4 = vector.broadcast %3 : vector<1x20xf32> to vector<8x20xf32>
    %5 = arith.addf %2, %4 : vector<8x20xf32>
    %cst_5 = arith.constant 0.000000e+00 : f32
    %6 = vector.broadcast %cst_5 : f32 to vector<8x20xf32>
    %7 = arith.maximumf %5, %6 : vector<8x20xf32>
    %c0_6 = arith.constant 0 : index
    %c0_7 = arith.constant 0 : index
    %8 = vector.load %arg4[%c0_6, %c0_7] : memref<20x128xf32, #tpu.memory_space<vmem>>, vector<20x128xf32>
    %cst_8 = arith.constant dense<0.000000e+00> : vector<8x128xf32>
    %9 = tpu.matmul %7, %8, %cst_8 {dimension_numbers = #tpu.dot_dimension_numbers<[1], [0], [0], [1], [0, 0, 1, 1], [], []>} : vector<8x20xf32>, vector<20x128xf32>, vector<8x128xf32> -> vector<8x128xf32>
    %c0_9 = arith.constant 0 : index
    %c0_10 = arith.constant 0 : index
    %10 = vector.load %arg5[%c0_9, %c0_10] : memref<1x128xf32, #tpu.memory_space<vmem>>, vector<1x128xf32>
    %11 = vector.broadcast %10 : vector<1x128xf32> to vector<8x128xf32>
    %12 = arith.addf %9, %11 : vector<8x128xf32>
    %c0_11 = arith.constant 0 : index
    %c0_12 = arith.constant 0 : index
    %13 = vector.load %arg6[%c0_11, %c0_12] : memref<128x20xf32, #tpu.memory_space<vmem>>, vector<128x20xf32>
    %cst_13 = arith.constant dense<0.000000e+00> : vector<8x20xf32>
    %14 = tpu.matmul %12, %13, %cst_13 {dimension_numbers = #tpu.dot_dimension_numbers<[1], [0], [0], [1], [0, 0, 1, 1], [], []>} : vector<8x128xf32>, vector<128x20xf32>, vector<8x20xf32> -> vector<8x20xf32>
    %c0_14 = arith.constant 0 : index
    %c0_15 = arith.constant 0 : index
    %15 = vector.load %arg7[%c0_14, %c0_15] : memref<1x20xf32, #tpu.memory_space<vmem>>, vector<1x20xf32>
    %16 = vector.broadcast %15 : vector<1x20xf32> to vector<8x20xf32>
    %17 = arith.addf %14, %16 : vector<8x20xf32>
    %cst_16 = arith.constant 0.000000e+00 : f32
    %18 = vector.broadcast %cst_16 : f32 to vector<8x20xf32>
    %19 = arith.maximumf %17, %18 : vector<8x20xf32>
    %c0_17 = arith.constant 0 : index
    %c0_18 = arith.constant 0 : index
    %20 = vector.load %arg8[%c0_17, %c0_18] : memref<20x128xf32, #tpu.memory_space<vmem>>, vector<20x128xf32>
    %cst_19 = arith.constant dense<0.000000e+00> : vector<8x128xf32>
    %21 = tpu.matmul %19, %20, %cst_19 {dimension_numbers = #tpu.dot_dimension_numbers<[1], [0], [0], [1], [0, 0, 1, 1], [], []>} : vector<8x20xf32>, vector<20x128xf32>, vector<8x128xf32> -> vector<8x128xf32>
    %c0_20 = arith.constant 0 : index
    %c0_21 = arith.constant 0 : index
    %22 = vector.load %arg9[%c0_20, %c0_21] : memref<1x128xf32, #tpu.memory_space<vmem>>, vector<1x128xf32>
    %23 = vector.broadcast %22 : vector<1x128xf32> to vector<8x128xf32>
    %24 = arith.addf %21, %23 : vector<8x128xf32>
    %25 = arith.negf %24 : vector<8x128xf32>
    %26 = math.exp %25 : vector<8x128xf32>
    %cst_22 = arith.constant 1.000000e+00 : f32
    %27 = vector.broadcast %cst_22 : f32 to vector<8x128xf32>
    %28 = arith.addf %27, %26 : vector<8x128xf32>
    %29 = arith.divf %27, %28 : vector<8x128xf32>
    %c0_23 = arith.constant 0 : index
    %c0_24 = arith.constant 0 : index
    %30 = vector.load %arg10[%c0_23, %c0_24] : memref<8x128xf32, #tpu.memory_space<vmem>>, vector<8x128xf32>
    tpu.vector_store %arg10[%c0_23, %c0_24], %12 {strides = array<i32>} : memref<8x128xf32, #tpu.memory_space<vmem>>, vector<8x128xf32>,
    %c0_25 = arith.constant 0 : index
    %c0_26 = arith.constant 0 : index
    %31 = vector.load %arg11[%c0_25, %c0_26] : memref<8x128xf32, #tpu.memory_space<vmem>>, vector<8x128xf32>
    tpu.vector_store %arg11[%c0_25, %c0_26], %29 {strides = array<i32>} : memref<8x128xf32, #tpu.memory_space<vmem>>, vector<8x128xf32>,
    return
  }
  func.func @transform_0(%arg0: i32) -> (i32, i32) {
    %c0_i32 = arith.constant 0 : i32
    %c0_i32_0 = arith.constant 0 : i32
    return %arg0, %c0_i32 : i32, i32
  }
  func.func @transform_1(%arg0: i32) -> (i32, i32) {
    %c0_i32 = arith.constant 0 : i32
    %c0_i32_0 = arith.constant 0 : i32
    %c0_i32_1 = arith.constant 0 : i32
    return %c0_i32, %c0_i32_0 : i32, i32
  }
  func.func @transform_2(%arg0: i32) -> (i32, i32) {
    %c0_i32 = arith.constant 0 : i32
    %c0_i32_0 = arith.constant 0 : i32
    %c0_i32_1 = arith.constant 0 : i32
    return %c0_i32, %c0_i32_0 : i32, i32
  }
  func.func @transform_3(%arg0: i32) -> (i32, i32) {
    %c0_i32 = arith.constant 0 : i32
    %c0_i32_0 = arith.constant 0 : i32
    %c0_i32_1 = arith.constant 0 : i32
    return %c0_i32, %c0_i32_0 : i32, i32
  }
  func.func @transform_4(%arg0: i32) -> (i32, i32) {
    %c0_i32 = arith.constant 0 : i32
    %c0_i32_0 = arith.constant 0 : i32
    %c0_i32_1 = arith.constant 0 : i32
    return %c0_i32, %c0_i32_0 : i32, i32
  }
  func.func @transform_5(%arg0: i32) -> (i32, i32) {
    %c0_i32 = arith.constant 0 : i32
    %c0_i32_0 = arith.constant 0 : i32
    %c0_i32_1 = arith.constant 0 : i32
    return %c0_i32, %c0_i32_0 : i32, i32
  }
  func.func @transform_6(%arg0: i32) -> (i32, i32) {
    %c0_i32 = arith.constant 0 : i32
    %c0_i32_0 = arith.constant 0 : i32
    %c0_i32_1 = arith.constant 0 : i32
    return %c0_i32, %c0_i32_0 : i32, i32
  }
  func.func @transform_7(%arg0: i32) -> (i32, i32) {
    %c0_i32 = arith.constant 0 : i32
    %c0_i32_0 = arith.constant 0 : i32
    %c0_i32_1 = arith.constant 0 : i32
    return %c0_i32, %c0_i32_0 : i32, i32
  }
  func.func @transform_8(%arg0: i32) -> (i32, i32) {
    %c0_i32 = arith.constant 0 : i32
    %c0_i32_0 = arith.constant 0 : i32
    %c0_i32_1 = arith.constant 0 : i32
    return %c0_i32, %c0_i32_0 : i32, i32
  }
  func.func @transform_9(%arg0: i32) -> (i32, i32) {
    %c0_i32 = arith.constant 0 : i32
    %c0_i32_0 = arith.constant 0 : i32
    return %arg0, %c0_i32 : i32, i32
  }
  func.func @transform_10(%arg0: i32) -> (i32, i32) {
    %c0_i32 = arith.constant 0 : i32
    %c0_i32_0 = arith.constant 0 : i32
    return %arg0, %c0_i32 : i32, i32
  }
}

</mosaic_0001>

<bundles_post_ra>
// kernel: tpu_custom_call.1
= control target key start
LH: loop header
LB: loop body
LE: loop exit
PB: predicated region body
PF: predicated region fallthrough
CT: control target
= control target key end

     0   :  { %16 = vsyncpa [#allocation3], 0  ;;  %v583_v1 = vmov 0.0   ;;  %vm584_vm0 = vmmov 0   ;;  %s779_s0 = inlined_call_operand.vmem [shape: f32[8,32], index: 0, kind: input, shape index: {}]   ;;  %s780_s1 = inlined_call_operand.vmem [shape: f32[32,20], index: 1, kind: input, shape index: {}]   ;;  %s781_s2 = inlined_call_operand.vmem [shape: f32[1,20], index: 2, kind: input, shape index: {}]   ;;  %s782_s3 = inlined_call_operand.vmem [shape: f32[20,128], index: 3, kind: input, shape index: {}]   ;;  %s783_s4 = inlined_call_operand.vmem [shape: f32[1,128], index: 4, kind: input, shape index: {}]   ;;  %s784_s5 = inlined_call_operand.vmem [shape: f32[128,20], index: 5, kind: input, shape index: {}]   ;;  %s785_s6 = inlined_call_operand.vmem [shape: f32[1,20], index: 6, kind: input, shape index: {}]   ;;  %s786_s7 = inlined_call_operand.vmem [shape: f32[20,128], index: 7, kind: input, shape index: {}]   ;;  %s787_s8 = inlined_call_operand.vmem [shape: f32[1,128], index: 8, kind: input, shape index: {}]   ;;  %s788_s9 = inlined_call_operand.hbm [shape: f32[8,128], index: 9, kind: output, shape index: {0}]   ;;  %s789_s10 = inlined_call_operand.hbm [shape: f32[8,128], index: 10, kind: output, shape index: {1}]  }
   0x1   :  { %v40_v0 = vld [vmem:[%s780_s1 + $0x18] sm:$0xff]  ;;  %467 = vmatprep.subr.mxu0 %v583_v1  ;;  %v39_v2 = vld [vmem:[%s780_s1 + $0x10] sm:$0xff]  ;;  %475 = vmatprep.mubr.msk.f32.mxu0 %vm584_vm0, %v583_v1 }
   0x2   :  { %468 = vmatpush3.msra.mxu0 %v40_v0  ;;  %487 = vmatprep.subr.mxu1 %v583_v1 }
   0x3   :  { %17 = vsyncpa [#allocation5], 0  ;;  %469 = vmatprep.subr.mxu0 %v583_v1  ;;  %v38_v3 = vld [vmem:[%s780_s1 + $0x8] sm:$0xff]  ;;  %519 = vmatprep.mubr.msk.f32.mxu1 %vm584_vm0, %v583_v1  ;;  %v37_v4 = vld [vmem:[%s780_s1] sm:$0xff]  ;;  %vm48_vm1 = vcmask 261120   ;;  %vm137_vm2 = vcmask 1043456  }
   0x4   :  { %470 = vmatpush3.msra.mxu0 %v39_v2  ;;  %v36_v5 = vld [vmem:[%s779_s0] sm:$0xff]  ;;  %v125_v6 = vld [vmem:[%s782_s3 + $0x10] sm:$0xf]  ;;  %v124_v7 = vld [vmem:[%s782_s3 + $0x8] sm:$0xff]  ;;  %vm133_vm3 = vcmask 162816   ;;  %s585_s24 = smov [#allocation2]  }
   0x5   :  { %471 = vmatprep.subr.mxu0 %v583_v1  ;;  %v123_v8 = vld [vmem:[%s782_s3] sm:$0xff]  ;;  %v226_v9 = vld [vmem:[%s784_s5 + $0x78] sm:$0xff]  ;;  %v225_v10 = vld [vmem:[%s784_s5 + $0x70] sm:$0xff]  ;;  %s405_s0 = sshll.u32 %s585_s24, 4  ;;  %s406_s0 = int_to_ptr.vmem [resolvable:$true] %s405_s0 }
   0x6   :  { %472 = vmatpush3.msra.mxu0 %v38_v3  ;;  %488 = vmatpush3.msra.mxu1 %v226_v9  ;;  %v224_v11 = vld [vmem:[%s784_s5 + $0x68] sm:$0xff]  ;;  %v223_v12 = vld [vmem:[%s784_s5 + $0x60] sm:$0xff]  ;;  %v222_v13 = vld [vmem:[%s784_s5 + $0x58] sm:$0xff]  ;;  %s539_s1 = scalar_lea.vmem %s406_s0, 128  ;;  %p544_p1 = scmp.lt.s32.totalorder %s406_s0, %s406_s0 }
   0x7   :  { %473 = vmatprep.subr.mxu0 %v583_v1  ;;  %489 = vmatprep.subr.mxu1 %v583_v1  ;;  %v221_v14 = vld [vmem:[%s784_s5 + $0x50] sm:$0xff]  ;;  %v220_v15 = vld [vmem:[%s784_s5 + $0x48] sm:$0xff]  ;;  %v219_v16 = vld [vmem:[%s784_s5 + $0x40] sm:$0xff]  ;;  %p540_p0 = scmp.ne.s32.totalorder %s406_s0, %s539_s1  ;;  %p545_p2 = scmp.lt.s32.totalorder %s539_s1, %s539_s1 }
   0x8   :  { %474 = vmatpush3.msra.mxu0 %v37_v4  ;;  %490 = vmatpush3.msra.mxu1 %v225_v10  ;;  %v218_v17 = vld [vmem:[%s784_s5 + $0x38] sm:$0xff]  ;;  %v217_v18 = vld [vmem:[%s784_s5 + $0x30] sm:$0xff]  ;;  %v216_v19 = vld [vmem:[%s784_s5 + $0x28] sm:$0xff] }
   0x9   :  { %476 = vmatmul.mubr.msk.f32.vlgmr.msra.gmra.mxu0 %vm48_vm1, %v36_v5  ;;  %478 = vmatprep.subr.mxu0 %v583_v1  ;;  %v215_v20 = vld [vmem:[%s784_s5 + $0x20] sm:$0xff]  ;;  %v214_v21 = vld [vmem:[%s784_s5 + $0x18] sm:$0xff]  ;;  %v213_v22 = vld [vmem:[%s784_s5 + $0x10] sm:$0xff]  ;;  %p546_p3 = por %p545_p2, %p544_p1 }
   0xa   :  { %484 = vmatprep.mubr.msk.f32.mxu0 %vm584_vm0, %v583_v1  ;;  %479 = vmatpush3.msk.msra.mxu0 %vm137_vm2, %v125_v6  ;;  %v427_v23 = vld [vmem:[%s781_s2] ss:$0 sm:$0xff]  ;;  %v212_v28 = vld [vmem:[%s784_s5 + $0x8] sm:$0xff]  ;;  %v307_v34 = vld [vmem:[%s786_s7 + $0x10] sm:$0xf] }
   0xb   :  { %480 = vmatprep.subr.mxu0 %v583_v1  ;;  %491 = vmatprep.subr.mxu1 %v583_v1  ;;  %v211_v29 = vld [vmem:[%s784_s5] sm:$0xff]  ;;  %v306_v35 = vld [vmem:[%s786_s7 + $0x8] sm:$0xff]  ;;  %p547_p4 = pnand %p546_p3, %p540_p0 }
   0xc   :  { %481 = vmatpush3.msra.mxu0 %v124_v7  ;;  %492 = vmatpush3.msra.mxu1 %v224_v11  ;;  %v429_v30 = vld [vmem:[%s783_s4] ss:$0 sm:$0xff] }
   0xd   :  { %482 = vmatprep.subr.mxu0 %v583_v1  ;;  %493 = vmatprep.subr.mxu1 %v583_v1  ;;  %v305_v36 = vld [vmem:[%s786_s7] sm:$0xff] }
   0xe   :  { %483 = vmatpush3.msra.mxu0 %v123_v8  ;;  %494 = vmatpush3.msra.mxu1 %v223_v12  ;;  %v432_v37 = vld [vmem:[%s785_s6] ss:$0 sm:$0xff] }
   0xf   :  { %522 = vmatprep.subr.mxu0 %v583_v1  ;;  %495 = vmatprep.subr.mxu1 %v583_v1 }
  0x10   :  { %496 = vmatpush3.msra.mxu1 %v222_v13 }
  0x11   :  { %497 = vmatprep.subr.mxu1 %v583_v1 }
  0x12   :  { %498 = vmatpush3.msra.mxu1 %v221_v14 }
  0x13   :  { %499 = vmatprep.subr.mxu1 %v583_v1 }
  0x14   :  { %500 = vmatpush3.msra.mxu1 %v220_v15 }
  0x15   :  { %501 = vmatprep.subr.mxu1 %v583_v1 }
  0x16   :  { %502 = vmatpush3.msra.mxu1 %v219_v16 }
  0x17   :  { %503 = vmatprep.subr.mxu1 %v583_v1 }
  0x18   :  { %504 = vmatpush3.msra.mxu1 %v218_v17 }
  0x19   :  { %505 = vmatprep.subr.mxu1 %v583_v1 }
  0x1a   :  { %506 = vmatpush3.msra.mxu1 %v217_v18 }
  0x1b   :  { %507 = vmatprep.subr.mxu1 %v583_v1 }
  0x1c   :  { %508 = vmatpush3.msra.mxu1 %v216_v19 }
  0x1d   :  { %509 = vmatprep.subr.mxu1 %v583_v1 }
  0x1e   :  { %510 = vmatpush3.msra.mxu1 %v215_v20 }
  0x1f   :  { %511 = vmatprep.subr.mxu1 %v583_v1 }
  0x20   :  { %512 = vmatpush3.msra.mxu1 %v214_v21 }
  0x21   :  { %513 = vmatprep.subr.mxu1 %v583_v1 }
  0x22   :  { %514 = vmatpush3.msra.mxu1 %v213_v22 }
  0x23   :  { %515 = vmatprep.subr.mxu1 %v583_v1 }
  0x24   :  { %516 = vmatpush3.msra.mxu1 %v212_v28 }
  0x25   :  { %517 = vmatprep.subr.mxu1 %v583_v1 }
  0x26   :  { %518 = vmatpush3.msra.mxu1 %v211_v29 }
  0xc9   :  { %v118_v24 = vpop.f32.mrf.mxu0 }
  0xca   :  { %v119_v25 = vadd.f32 %v427_v23, %v118_v24 }
  0xcb   :  { %v477_v26 = vpop.f32.mrf.mxu0 }
  0xcc   :  { %v122_v27 = vmax.f32 %v119_v25, 0.0 }
  0xce   :  { %485 = vmatmul.mubr.msk.f32.vlgmr.msra.gmra.mxu0 %vm133_vm3, %v122_v27 }
  0xcf   :  { %528 = vmatprep.mubr.msk.f32.mxu0 %vm584_vm0, %v583_v1  ;;  %523 = vmatpush3.msk.msra.mxu0 %vm137_vm2, %v307_v34 }
  0xd0   :  { %524 = vmatprep.subr.mxu0 %v583_v1 }
  0xd1   :  { %525 = vmatpush3.msra.mxu0 %v306_v35 }
  0xd2   :  { %526 = vmatprep.subr.mxu0 %v583_v1 }
  0xd3   :  { %527 = vmatpush3.msra.mxu0 %v305_v36 }
 0x18e   :  { %v207_v31 = vpop.f32.mrf.mxu0 }
 0x18f   :  { %v208_v32 = vadd.f32 %v429_v30, %v207_v31 }
 0x190   :  { %v486_v33 = vpop.f32.mrf.mxu0 }
 0x191   :  { %397 = vst [vmem:[#allocation2] sm:$0xff] %v208_v32  ;;  %520 = vmatmul.mubr.f32.vlgmr.msra.gmra.mxu1 %v208_v32 }
 0x251   :  { %v300_v38 = vpop.f32.mrf.mxu1 }
 0x252   :  { %v301_v39 = vadd.f32 %v432_v37, %v300_v38 }
 0x253   :  { %v521_v40 = vpop.f32.mrf.mxu1 }
 0x254   :  { %v304_v41 = vmax.f32 %v301_v39, 0.0 }
 0x256   :  { %529 = vmatmul.mubr.msk.f32.vlgmr.msra.gmra.mxu0 %vm133_vm3, %v304_v41 }
 0x257   :  { %550 = shalt.err (!%p547_p4)
}
 0x258   :  { %408 = dma.vmem_to_hbm [thread:$0]  %s406_s0, 128, %s788_s9, [#allocation3]   ;;  %v433_v42 = vld [vmem:[%s787_s8] ss:$0 sm:$0xff] }
 0x259   :  { %s586_s27 = smov [#allocation4]  }
 0x25a   :  { %s415_s28 = sshll.u32 %s586_s27, 4  ;;  %s416_s28 = int_to_ptr.vmem [resolvable:$true] %s415_s28 }
 0x25b   :  { %s559_s29 = scalar_lea.vmem %s416_s28, 128  ;;  %p564_p6 = scmp.lt.s32.totalorder %s416_s28, %s416_s28 }
 0x25c   :  { %p560_p5 = scmp.ne.s32.totalorder %s416_s28, %s559_s29  ;;  %p565_p7 = scmp.lt.s32.totalorder %s559_s29, %s559_s29 }
 0x25e   :  { %p566_p8 = por %p565_p7, %p564_p6 }
 0x260   :  { %p567_p9 = pnand %p566_p8, %p560_p5 }
 0x316   :  { %v387_v43 = vpop.f32.mrf.mxu0 }
 0x317   :  { %v388_v44 = vadd.f32 %v433_v42, %v387_v43 }
 0x318   :  { %v530_v45 = vpop.f32.mrf.mxu0 }
 0x319   :  { %v436_v46 = vmul.f32 -1.442695, %v388_v44 }
 0x31b   :  { %535 = vpow2.f32 %v436_v46 }
 0x328   :  { %v536_v47 = vpop.eup %535 }
 0x329   :  { %v394_v48 = vadd.f32 1.0, %v536_v47 }
 0x32b   :  { %537 = vrcp.f32 %v394_v48 }
 0x338   :  { %v538_v49 = vpop.eup %537 }
 0x339   :  { %398 = vst [vmem:[#allocation4] sm:$0xff] %v538_v49 }
 0x33a   :  { %570 = shalt.err (!%p567_p9)
}
 0x33b   :  { %418 = dma.vmem_to_hbm [thread:$0]  %s416_s28, 128, %s789_s10, [#allocation5]  }
 0x33c   :  { %579 = dma.done.wait [#allocation3], 128  }
 0x33d   :  { %580 = vsyncadd [#allocation3], 4294967168 }
 0x33e   :  { %581 = dma.done.wait [#allocation5], 128  }
 0x33f   :  { %582 = vsyncadd [#allocation5], 4294967168 }
 0x340   :  { %425 = vsyncpa [#allocation3], 1 }
 0x341   :  { %426 = vsyncpa [#allocation5], 1 }

</bundles_post_ra>
